<compile_context>
chip_gen: v7x
topology: tpu7x:2x2x1
jax: 0.10.0
libtpu: 0.0.40
codegen_flags: <defaults>
</compile_context>

<pallas_src>
import jax
import jax.numpy as jnp
from jax.experimental import pallas as pl
from jax.experimental.pallas import tpu as pltpu


def _mlp_kernel(w1_ref, b1_ref, w2_ref, b2_ref, w3_ref, b3_ref, x_ref, o_ref):
    # w*_ref / b*_ref live in SMEM (scalar prefetch); x_ref is a (in_f, tb)
    # batch-in-lanes VMEM tile; o_ref is a (out_f, tb) lane-dense VMEM tile.
    in_f, h1_f = w1_ref.shape
    _, h2_f = w2_ref.shape
    _, out_f = w3_ref.shape

    xs = [x_ref[i:i + 1, :] for i in range(in_f)]          # each (1, tb)

    # Layer 1: h1[j] = relu(sum_i w1[i,j] * x[i] + b1[j])   (VPU FMAs)
    h1 = []
    for j in range(h1_f):
        s = xs[0] * w1_ref[0, j]
        for i in range(1, in_f):
            s = s + xs[i] * w1_ref[i, j]
        h1.append(jnp.maximum(s + b1_ref[j], 0.0))

    # Layer 2: h2[j] = relu(sum_i w2[i,j] * h1[i] + b2[j])
    h2 = []
    for j in range(h2_f):
        s = h1[0] * w2_ref[0, j]
        for i in range(1, h1_f):
            s = s + h1[i] * w2_ref[i, j]
        h2.append(jnp.maximum(s + b2_ref[j], 0.0))

    # Layer 3: out[j] = sum_i w3[i,j] * h2[i] + b3[j]   (out_f == 1 here)
    for j in range(out_f):
        s = h2[0] * w3_ref[0, j]
        for i in range(1, h2_f):
            s = s + h2[i] * w3_ref[i, j]
        o_ref[j:j + 1, :] = (s + b3_ref[j]).astype(o_ref.dtype)


def net_forward(x, params, *, tb=512):
    """Forward pass of Net.  x: (B, input_size) f32 -> (B,) f32."""
    w1, b1, w2, b2, w3, b3 = params
    B, in_f = x.shape
    out_f = w3.shape[1]
    assert tb % 128 == 0, "batch tile must be lane-aligned (multiple of 128)"

    # Pad ragged batches up to a whole number of tiles; padded columns are
    # computed on garbage-free zeros and sliced off at the end.
    n_tiles = pl.cdiv(B, tb)
    B_pad = n_tiles * tb

    x_t = x.T                                              # (in_f, B) batch-in-lanes
    if B_pad != B:
        x_t = jnp.pad(x_t, ((0, 0), (0, B_pad - B)))

    cost = pl.CostEstimate(
        flops=90 * B_pad,                                  # ~(20+50+10+relus) per row
        transcendentals=0,
        bytes_accessed=(in_f + out_f) * 4 * B_pad,         # ~12 B per row
    )

    out = pl.pallas_call(
        _mlp_kernel,
        out_shape=jax.ShapeDtypeStruct((out_f, B_pad), jnp.float32),
        grid_spec=pltpu.PrefetchScalarGridSpec(
            num_scalar_prefetch=6,                         # w1,b1,w2,b2,w3,b3 -> SMEM
            grid=(n_tiles,),
            in_specs=[
                # x tile: full feature extent (== array dim), lane-dense batch.
                pl.BlockSpec((in_f, tb),
                             lambda i, w1, b1, w2, b2, w3, b3: (0, i)),
            ],
            out_specs=pl.BlockSpec((out_f, tb),
                                   lambda i, w1, b1, w2, b2, w3, b3: (0, i)),
        ),
        compiler_params=pltpu.CompilerParams(
            dimension_semantics=("parallel",)),            # shard grid across TCs (v7x)
        cost_estimate=cost,
    )(w1, b1, w2, b2, w3, b3, x_t)

    # out.squeeze(-1) of the PyTorch module == take the single output row.
    return out[0, :B]


def init_params(key, input_size=2):
    """Parameters with the module's shapes: weights N(0, 0.01) (stored as
    (in, out) = transpose of torch's (out, in)); biases use torch's default
    U(-1/sqrt(fan_in), 1/sqrt(fan_in))."""
    k = jax.random.split(key, 6)

    def w(kk, fan_in, fan_out):
        return (0.01 * jax.random.normal(kk, (fan_in, fan_out))).astype(jnp.float32)

    def b(kk, fan_in, fan_out):
        bound = 1.0 / (fan_in ** 0.5)
        return jax.random.uniform(kk, (fan_out,), minval=-bound,
                                  maxval=bound).astype(jnp.float32)

    w1 = w(k[0], input_size, 5)
    b1 = b(k[1], input_size, 5)
    w2 = w(k[2], 5, 5)
    b2 = b(k[3], 5, 5)
    w3 = w(k[4], 5, 1)
    b3 = b(k[5], 5, 1)
    return (w1, b1, w2, b2, w3, b3)


def net_forward_ref(x, params):
    """Pure-JAX reference for correctness checking."""
    w1, b1, w2, b2, w3, b3 = params
    h1 = jnp.maximum(x @ w1 + b1, 0.0)
    h2 = jnp.maximum(h1 @ w2 + b2, 0.0)
    return (h2 @ w3 + b3)[:, 0]


if __name__ == "__main__":
    key = jax.random.PRNGKey(0)
    kx, kp = jax.random.split(key)

    input_size = 2
    params = init_params(kp, input_size=input_size)

    # Small batch + a ragged batch (not a multiple of the 512-row tile,
    # exercises padding and a multi-step grid).
    for B in (16, 1000):
        x = jax.random.normal(jax.random.fold_in(kx, B), (B, input_size),
                              dtype=jnp.float32)
        out = jax.block_until_ready(net_forward(x, params))
        ref = net_forward_ref(x, params)
        assert out.shape == (B,)
        assert jnp.allclose(out, ref, atol=1e-5, rtol=1e-5)

    print("KERNEL_OK")
</pallas_src>

<mosaic_0001>
module attributes {stable_mosaic.version = 11 : i64} {
  func.func @_mlp_kernel(%arg0: i32, %arg1: memref<2x5xf32, #tpu.memory_space<smem>>, %arg2: memref<5xf32, #tpu.memory_space<smem>>, %arg3: memref<5x5xf32, #tpu.memory_space<smem>>, %arg4: memref<5xf32, #tpu.memory_space<smem>>, %arg5: memref<5x1xf32, #tpu.memory_space<smem>>, %arg6: memref<1xf32, #tpu.memory_space<smem>>, %arg7: memref<2x512xf32, #tpu.memory_space<vmem>>, %arg8: memref<1x512xf32, #tpu.memory_space<vmem>>) attributes {dimension_semantics = [#tpu.dimension_semantics<parallel>], iteration_bounds = array<i64: 1>, scalar_prefetch = 6 : i64, scratch_operands = 0 : i64, tpu.core_type = #tpu.core_type<tc>, window_params = [{transform_indices = @transform_0, window_bounds = array<i64: 2, 512>}, {transform_indices = @transform_1, window_bounds = array<i64: 1, 512>}]} {
    %c0 = arith.constant 0 : index
    %c0_0 = arith.constant 0 : index
    %0 = vector.load %arg7[%c0, %c0_0] : memref<2x512xf32, #tpu.memory_space<vmem>>, vector<1x512xf32>
    %c1 = arith.constant 1 : index
    %c0_1 = arith.constant 0 : index
    %1 = vector.load %arg7[%c1, %c0_1] : memref<2x512xf32, #tpu.memory_space<vmem>>, vector<1x512xf32>
    %c0_2 = arith.constant 0 : index
    %c0_3 = arith.constant 0 : index
    %2 = memref.load %arg1[%c0_2, %c0_3] : memref<2x5xf32, #tpu.memory_space<smem>>
    %3 = vector.broadcast %2 : f32 to vector<1x512xf32>
    %4 = arith.mulf %0, %3 : vector<1x512xf32>
    %c1_4 = arith.constant 1 : index
    %c0_5 = arith.constant 0 : index
    %5 = memref.load %arg1[%c1_4, %c0_5] : memref<2x5xf32, #tpu.memory_space<smem>>
    %6 = vector.broadcast %5 : f32 to vector<1x512xf32>
    %7 = arith.mulf %1, %6 : vector<1x512xf32>
    %8 = arith.addf %4, %7 : vector<1x512xf32>
    %c0_6 = arith.constant 0 : index
    %9 = memref.load %arg2[%c0_6] : memref<5xf32, #tpu.memory_space<smem>>
    %10 = vector.broadcast %9 : f32 to vector<1x512xf32>
    %11 = arith.addf %8, %10 : vector<1x512xf32>
    %cst = arith.constant 0.000000e+00 : f32
    %12 = vector.broadcast %cst : f32 to vector<1x512xf32>
    %13 = arith.maximumf %11, %12 : vector<1x512xf32>
    %c0_7 = arith.constant 0 : index
    %c1_8 = arith.constant 1 : index
    %14 = memref.load %arg1[%c0_7, %c1_8] : memref<2x5xf32, #tpu.memory_space<smem>>
    %15 = vector.broadcast %14 : f32 to vector<1x512xf32>
    %16 = arith.mulf %0, %15 : vector<1x512xf32>
    %c1_9 = arith.constant 1 : index
    %c1_10 = arith.constant 1 : index
    %17 = memref.load %arg1[%c1_9, %c1_10] : memref<2x5xf32, #tpu.memory_space<smem>>
    %18 = vector.broadcast %17 : f32 to vector<1x512xf32>
    %19 = arith.mulf %1, %18 : vector<1x512xf32>
    %20 = arith.addf %16, %19 : vector<1x512xf32>
    %c1_11 = arith.constant 1 : index
    %21 = memref.load %arg2[%c1_11] : memref<5xf32, #tpu.memory_space<smem>>
    %22 = vector.broadcast %21 : f32 to vector<1x512xf32>
    %23 = arith.addf %20, %22 : vector<1x512xf32>
    %cst_12 = arith.constant 0.000000e+00 : f32
    %24 = vector.broadcast %cst_12 : f32 to vector<1x512xf32>
    %25 = arith.maximumf %23, %24 : vector<1x512xf32>
    %c0_13 = arith.constant 0 : index
    %c2 = arith.constant 2 : index
    %26 = memref.load %arg1[%c0_13, %c2] : memref<2x5xf32, #tpu.memory_space<smem>>
    %27 = vector.broadcast %26 : f32 to vector<1x512xf32>
    %28 = arith.mulf %0, %27 : vector<1x512xf32>
    %c1_14 = arith.constant 1 : index
    %c2_15 = arith.constant 2 : index
    %29 = memref.load %arg1[%c1_14, %c2_15] : memref<2x5xf32, #tpu.memory_space<smem>>
    %30 = vector.broadcast %29 : f32 to vector<1x512xf32>
    %31 = arith.mulf %1, %30 : vector<1x512xf32>
    %32 = arith.addf %28, %31 : vector<1x512xf32>
    %c2_16 = arith.constant 2 : index
    %33 = memref.load %arg2[%c2_16] : memref<5xf32, #tpu.memory_space<smem>>
    %34 = vector.broadcast %33 : f32 to vector<1x512xf32>
    %35 = arith.addf %32, %34 : vector<1x512xf32>
    %cst_17 = arith.constant 0.000000e+00 : f32
    %36 = vector.broadcast %cst_17 : f32 to vector<1x512xf32>
    %37 = arith.maximumf %35, %36 : vector<1x512xf32>
    %c0_18 = arith.constant 0 : index
    %c3 = arith.constant 3 : index
    %38 = memref.load %arg1[%c0_18, %c3] : memref<2x5xf32, #tpu.memory_space<smem>>
    %39 = vector.broadcast %38 : f32 to vector<1x512xf32>
    %40 = arith.mulf %0, %39 : vector<1x512xf32>
    %c1_19 = arith.constant 1 : index
    %c3_20 = arith.constant 3 : index
    %41 = memref.load %arg1[%c1_19, %c3_20] : memref<2x5xf32, #tpu.memory_space<smem>>
    %42 = vector.broadcast %41 : f32 to vector<1x512xf32>
    %43 = arith.mulf %1, %42 : vector<1x512xf32>
    %44 = arith.addf %40, %43 : vector<1x512xf32>
    %c3_21 = arith.constant 3 : index
    %45 = memref.load %arg2[%c3_21] : memref<5xf32, #tpu.memory_space<smem>>
    %46 = vector.broadcast %45 : f32 to vector<1x512xf32>
    %47 = arith.addf %44, %46 : vector<1x512xf32>
    %cst_22 = arith.constant 0.000000e+00 : f32
    %48 = vector.broadcast %cst_22 : f32 to vector<1x512xf32>
    %49 = arith.maximumf %47, %48 : vector<1x512xf32>
    %c0_23 = arith.constant 0 : index
    %c4 = arith.constant 4 : index
    %50 = memref.load %arg1[%c0_23, %c4] : memref<2x5xf32, #tpu.memory_space<smem>>
    %51 = vector.broadcast %50 : f32 to vector<1x512xf32>
    %52 = arith.mulf %0, %51 : vector<1x512xf32>
    %c1_24 = arith.constant 1 : index
    %c4_25 = arith.constant 4 : index
    %53 = memref.load %arg1[%c1_24, %c4_25] : memref<2x5xf32, #tpu.memory_space<smem>>
    %54 = vector.broadcast %53 : f32 to vector<1x512xf32>
    %55 = arith.mulf %1, %54 : vector<1x512xf32>
    %56 = arith.addf %52, %55 : vector<1x512xf32>
    %c4_26 = arith.constant 4 : index
    %57 = memref.load %arg2[%c4_26] : memref<5xf32, #tpu.memory_space<smem>>
    %58 = vector.broadcast %57 : f32 to vector<1x512xf32>
    %59 = arith.addf %56, %58 : vector<1x512xf32>
    %cst_27 = arith.constant 0.000000e+00 : f32
    %60 = vector.broadcast %cst_27 : f32 to vector<1x512xf32>
    %61 = arith.maximumf %59, %60 : vector<1x512xf32>
    %c0_28 = arith.constant 0 : index
    %c0_29 = arith.constant 0 : index
    %62 = memref.load %arg3[%c0_28, %c0_29] : memref<5x5xf32, #tpu.memory_space<smem>>
    %63 = vector.broadcast %62 : f32 to vector<1x512xf32>
    %64 = arith.mulf %13, %63 : vector<1x512xf32>
    %c1_30 = arith.constant 1 : index
    %c0_31 = arith.constant 0 : index
    %65 = memref.load %arg3[%c1_30, %c0_31] : memref<5x5xf32, #tpu.memory_space<smem>>
    %66 = vector.broadcast %65 : f32 to vector<1x512xf32>
    %67 = arith.mulf %25, %66 : vector<1x512xf32>
    %68 = arith.addf %64, %67 : vector<1x512xf32>
    %c2_32 = arith.constant 2 : index
    %c0_33 = arith.constant 0 : index
    %69 = memref.load %arg3[%c2_32, %c0_33] : memref<5x5xf32, #tpu.memory_space<smem>>
    %70 = vector.broadcast %69 : f32 to vector<1x512xf32>
    %71 = arith.mulf %37, %70 : vector<1x512xf32>
    %72 = arith.addf %68, %71 : vector<1x512xf32>
    %c3_34 = arith.constant 3 : index
    %c0_35 = arith.constant 0 : index
    %73 = memref.load %arg3[%c3_34, %c0_35] : memref<5x5xf32, #tpu.memory_space<smem>>
    %74 = vector.broadcast %73 : f32 to vector<1x512xf32>
    %75 = arith.mulf %49, %74 : vector<1x512xf32>
    %76 = arith.addf %72, %75 : vector<1x512xf32>
    %c4_36 = arith.constant 4 : index
    %c0_37 = arith.constant 0 : index
    %77 = memref.load %arg3[%c4_36, %c0_37] : memref<5x5xf32, #tpu.memory_space<smem>>
    %78 = vector.broadcast %77 : f32 to vector<1x512xf32>
    %79 = arith.mulf %61, %78 : vector<1x512xf32>
    %80 = arith.addf %76, %79 : vector<1x512xf32>
    %c0_38 = arith.constant 0 : index
    %81 = memref.load %arg4[%c0_38] : memref<5xf32, #tpu.memory_space<smem>>
    %82 = vector.broadcast %81 : f32 to vector<1x512xf32>
    %83 = arith.addf %80, %82 : vector<1x512xf32>
    %cst_39 = arith.constant 0.000000e+00 : f32
    %84 = vector.broadcast %cst_39 : f32 to vector<1x512xf32>
    %85 = arith.maximumf %83, %84 : vector<1x512xf32>
    %c0_40 = arith.constant 0 : index
    %c1_41 = arith.constant 1 : index
    %86 = memref.load %arg3[%c0_40, %c1_41] : memref<5x5xf32, #tpu.memory_space<smem>>
    %87 = vector.broadcast %86 : f32 to vector<1x512xf32>
    %88 = arith.mulf %13, %87 : vector<1x512xf32>
    %c1_42 = arith.constant 1 : index
    %c1_43 = arith.constant 1 : index
    %89 = memref.load %arg3[%c1_42, %c1_43] : memref<5x5xf32, #tpu.memory_space<smem>>
    %90 = vector.broadcast %89 : f32 to vector<1x512xf32>
    %91 = arith.mulf %25, %90 : vector<1x512xf32>
    %92 = arith.addf %88, %91 : vector<1x512xf32>
    %c2_44 = arith.constant 2 : index
    %c1_45 = arith.constant 1 : index
    %93 = memref.load %arg3[%c2_44, %c1_45] : memref<5x5xf32, #tpu.memory_space<smem>>
    %94 = vector.broadcast %93 : f32 to vector<1x512xf32>
    %95 = arith.mulf %37, %94 : vector<1x512xf32>
    %96 = arith.addf %92, %95 : vector<1x512xf32>
    %c3_46 = arith.constant 3 : index
    %c1_47 = arith.constant 1 : index
    %97 = memref.load %arg3[%c3_46, %c1_47] : memref<5x5xf32, #tpu.memory_space<smem>>
    %98 = vector.broadcast %97 : f32 to vector<1x512xf32>
    %99 = arith.mulf %49, %98 : vector<1x512xf32>
    %100 = arith.addf %96, %99 : vector<1x512xf32>
    %c4_48 = arith.constant 4 : index
    %c1_49 = arith.constant 1 : index
    %101 = memref.load %arg3[%c4_48, %c1_49] : memref<5x5xf32, #tpu.memory_space<smem>>
    %102 = vector.broadcast %101 : f32 to vector<1x512xf32>
    %103 = arith.mulf %61, %102 : vector<1x512xf32>
    %104 = arith.addf %100, %103 : vector<1x512xf32>
    %c1_50 = arith.constant 1 : index
    %105 = memref.load %arg4[%c1_50] : memref<5xf32, #tpu.memory_space<smem>>
    %106 = vector.broadcast %105 : f32 to vector<1x512xf32>
    %107 = arith.addf %104, %106 : vector<1x512xf32>
    %cst_51 = arith.constant 0.000000e+00 : f32
    %108 = vector.broadcast %cst_51 : f32 to vector<1x512xf32>
    %109 = arith.maximumf %107, %108 : vector<1x512xf32>
    %c0_52 = arith.constant 0 : index
    %c2_53 = arith.constant 2 : index
    %110 = memref.load %arg3[%c0_52, %c2_53] : memref<5x5xf32, #tpu.memory_space<smem>>
    %111 = vector.broadcast %110 : f32 to vector<1x512xf32>
    %112 = arith.mulf %13, %111 : vector<1x512xf32>
    %c1_54 = arith.constant 1 : index
    %c2_55 = arith.constant 2 : index
    %113 = memref.load %arg3[%c1_54, %c2_55] : memref<5x5xf32, #tpu.memory_space<smem>>
    %114 = vector.broadcast %113 : f32 to vector<1x512xf32>
    %115 = arith.mulf %25, %114 : vector<1x512xf32>
    %116 = arith.addf %112, %115 : vector<1x512xf32>
    %c2_56 = arith.constant 2 : index
    %c2_57 = arith.constant 2 : index
    %117 = memref.load %arg3[%c2_56, %c2_57] : memref<5x5xf32, #tpu.memory_space<smem>>
    %118 = vector.broadcast %117 : f32 to vector<1x512xf32>
    %119 = arith.mulf %37, %118 : vector<1x512xf32>
    %120 = arith.addf %116, %119 : vector<1x512xf32>
    %c3_58 = arith.constant 3 : index
    %c2_59 = arith.constant 2 : index
    %121 = memref.load %arg3[%c3_58, %c2_59] : memref<5x5xf32, #tpu.memory_space<smem>>
    %122 = vector.broadcast %121 : f32 to vector<1x512xf32>
    %123 = arith.mulf %49, %122 : vector<1x512xf32>
    %124 = arith.addf %120, %123 : vector<1x512xf32>
    %c4_60 = arith.constant 4 : index
    %c2_61 = arith.constant 2 : index
    %125 = memref.load %arg3[%c4_60, %c2_61] : memref<5x5xf32, #tpu.memory_space<smem>>
    %126 = vector.broadcast %125 : f32 to vector<1x512xf32>
    %127 = arith.mulf %61, %126 : vector<1x512xf32>
    %128 = arith.addf %124, %127 : vector<1x512xf32>
    %c2_62 = arith.constant 2 : index
    %129 = memref.load %arg4[%c2_62] : memref<5xf32, #tpu.memory_space<smem>>
    %130 = vector.broadcast %129 : f32 to vector<1x512xf32>
    %131 = arith.addf %128, %130 : vector<1x512xf32>
    %cst_63 = arith.constant 0.000000e+00 : f32
    %132 = vector.broadcast %cst_63 : f32 to vector<1x512xf32>
    %133 = arith.maximumf %131, %132 : vector<1x512xf32>
    %c0_64 = arith.constant 0 : index
    %c3_65 = arith.constant 3 : index
    %134 = memref.load %arg3[%c0_64, %c3_65] : memref<5x5xf32, #tpu.memory_space<smem>>
    %135 = vector.broadcast %134 : f32 to vector<1x512xf32>
    %136 = arith.mulf %13, %135 : vector<1x512xf32>
    %c1_66 = arith.constant 1 : index
    %c3_67 = arith.constant 3 : index
    %137 = memref.load %arg3[%c1_66, %c3_67] : memref<5x5xf32, #tpu.memory_space<smem>>
    %138 = vector.broadcast %137 : f32 to vector<1x512xf32>
    %139 = arith.mulf %25, %138 : vector<1x512xf32>
    %140 = arith.addf %136, %139 : vector<1x512xf32>
    %c2_68 = arith.constant 2 : index
    %c3_69 = arith.constant 3 : index
    %141 = memref.load %arg3[%c2_68, %c3_69] : memref<5x5xf32, #tpu.memory_space<smem>>
    %142 = vector.broadcast %141 : f32 to vector<1x512xf32>
    %143 = arith.mulf %37, %142 : vector<1x512xf32>
    %144 = arith.addf %140, %143 : vector<1x512xf32>
    %c3_70 = arith.constant 3 : index
    %c3_71 = arith.constant 3 : index
    %145 = memref.load %arg3[%c3_70, %c3_71] : memref<5x5xf32, #tpu.memory_space<smem>>
    %146 = vector.broadcast %145 : f32 to vector<1x512xf32>
    %147 = arith.mulf %49, %146 : vector<1x512xf32>
    %148 = arith.addf %144, %147 : vector<1x512xf32>
    %c4_72 = arith.constant 4 : index
    %c3_73 = arith.constant 3 : index
    %149 = memref.load %arg3[%c4_72, %c3_73] : memref<5x5xf32, #tpu.memory_space<smem>>
    %150 = vector.broadcast %149 : f32 to vector<1x512xf32>
    %151 = arith.mulf %61, %150 : vector<1x512xf32>
    %152 = arith.addf %148, %151 : vector<1x512xf32>
    %c3_74 = arith.constant 3 : index
    %153 = memref.load %arg4[%c3_74] : memref<5xf32, #tpu.memory_space<smem>>
    %154 = vector.broadcast %153 : f32 to vector<1x512xf32>
    %155 = arith.addf %152, %154 : vector<1x512xf32>
    %cst_75 = arith.constant 0.000000e+00 : f32
    %156 = vector.broadcast %cst_75 : f32 to vector<1x512xf32>
    %157 = arith.maximumf %155, %156 : vector<1x512xf32>
    %c0_76 = arith.constant 0 : index
    %c4_77 = arith.constant 4 : index
    %158 = memref.load %arg3[%c0_76, %c4_77] : memref<5x5xf32, #tpu.memory_space<smem>>
    %159 = vector.broadcast %158 : f32 to vector<1x512xf32>
    %160 = arith.mulf %13, %159 : vector<1x512xf32>
    %c1_78 = arith.constant 1 : index
    %c4_79 = arith.constant 4 : index
    %161 = memref.load %arg3[%c1_78, %c4_79] : memref<5x5xf32, #tpu.memory_space<smem>>
    %162 = vector.broadcast %161 : f32 to vector<1x512xf32>
    %163 = arith.mulf %25, %162 : vector<1x512xf32>
    %164 = arith.addf %160, %163 : vector<1x512xf32>
    %c2_80 = arith.constant 2 : index
    %c4_81 = arith.constant 4 : index
    %165 = memref.load %arg3[%c2_80, %c4_81] : memref<5x5xf32, #tpu.memory_space<smem>>
    %166 = vector.broadcast %165 : f32 to vector<1x512xf32>
    %167 = arith.mulf %37, %166 : vector<1x512xf32>
    %168 = arith.addf %164, %167 : vector<1x512xf32>
    %c3_82 = arith.constant 3 : index
    %c4_83 = arith.constant 4 : index
    %169 = memref.load %arg3[%c3_82, %c4_83] : memref<5x5xf32, #tpu.memory_space<smem>>
    %170 = vector.broadcast %169 : f32 to vector<1x512xf32>
    %171 = arith.mulf %49, %170 : vector<1x512xf32>
    %172 = arith.addf %168, %171 : vector<1x512xf32>
    %c4_84 = arith.constant 4 : index
    %c4_85 = arith.constant 4 : index
    %173 = memref.load %arg3[%c4_84, %c4_85] : memref<5x5xf32, #tpu.memory_space<smem>>
    %174 = vector.broadcast %173 : f32 to vector<1x512xf32>
    %175 = arith.mulf %61, %174 : vector<1x512xf32>
    %176 = arith.addf %172, %175 : vector<1x512xf32>
    %c4_86 = arith.constant 4 : index
    %177 = memref.load %arg4[%c4_86] : memref<5xf32, #tpu.memory_space<smem>>
    %178 = vector.broadcast %177 : f32 to vector<1x512xf32>
    %179 = arith.addf %176, %178 : vector<1x512xf32>
    %cst_87 = arith.constant 0.000000e+00 : f32
    %180 = vector.broadcast %cst_87 : f32 to vector<1x512xf32>
    %181 = arith.maximumf %179, %180 : vector<1x512xf32>
    %c0_88 = arith.constant 0 : index
    %c0_89 = arith.constant 0 : index
    %182 = memref.load %arg5[%c0_88, %c0_89] : memref<5x1xf32, #tpu.memory_space<smem>>
    %183 = vector.broadcast %182 : f32 to vector<1x512xf32>
    %184 = arith.mulf %85, %183 : vector<1x512xf32>
    %c1_90 = arith.constant 1 : index
    %c0_91 = arith.constant 0 : index
    %185 = memref.load %arg5[%c1_90, %c0_91] : memref<5x1xf32, #tpu.memory_space<smem>>
    %186 = vector.broadcast %185 : f32 to vector<1x512xf32>
    %187 = arith.mulf %109, %186 : vector<1x512xf32>
    %188 = arith.addf %184, %187 : vector<1x512xf32>
    %c2_92 = arith.constant 2 : index
    %c0_93 = arith.constant 0 : index
    %189 = memref.load %arg5[%c2_92, %c0_93] : memref<5x1xf32, #tpu.memory_space<smem>>
    %190 = vector.broadcast %189 : f32 to vector<1x512xf32>
    %191 = arith.mulf %133, %190 : vector<1x512xf32>
    %192 = arith.addf %188, %191 : vector<1x512xf32>
    %c3_94 = arith.constant 3 : index
    %c0_95 = arith.constant 0 : index
    %193 = memref.load %arg5[%c3_94, %c0_95] : memref<5x1xf32, #tpu.memory_space<smem>>
    %194 = vector.broadcast %193 : f32 to vector<1x512xf32>
    %195 = arith.mulf %157, %194 : vector<1x512xf32>
    %196 = arith.addf %192, %195 : vector<1x512xf32>
    %c4_96 = arith.constant 4 : index
    %c0_97 = arith.constant 0 : index
    %197 = memref.load %arg5[%c4_96, %c0_97] : memref<5x1xf32, #tpu.memory_space<smem>>
    %198 = vector.broadcast %197 : f32 to vector<1x512xf32>
    %199 = arith.mulf %181, %198 : vector<1x512xf32>
    %200 = arith.addf %196, %199 : vector<1x512xf32>
    %c0_98 = arith.constant 0 : index
    %201 = memref.load %arg6[%c0_98] : memref<1xf32, #tpu.memory_space<smem>>
    %202 = vector.broadcast %201 : f32 to vector<1x512xf32>
    %203 = arith.addf %200, %202 : vector<1x512xf32>
    %c0_99 = arith.constant 0 : index
    %c0_100 = arith.constant 0 : index
    %204 = vector.load %arg8[%c0_99, %c0_100] : memref<1x512xf32, #tpu.memory_space<vmem>>, vector<1x512xf32>
    tpu.vector_store %arg8[%c0_99, %c0_100], %203 {strides = array<i32>} : memref<1x512xf32, #tpu.memory_space<vmem>>, vector<1x512xf32>,
    return
  }
  func.func @transform_0(%arg0: i32, %arg1: memref<2x5xf32, #tpu.memory_space<smem>>, %arg2: memref<5xf32, #tpu.memory_space<smem>>, %arg3: memref<5x5xf32, #tpu.memory_space<smem>>, %arg4: memref<5xf32, #tpu.memory_space<smem>>, %arg5: memref<5x1xf32, #tpu.memory_space<smem>>, %arg6: memref<1xf32, #tpu.memory_space<smem>>) -> (i32, i32) {
    %c0_i32 = arith.constant 0 : i32
    %c0_i32_0 = arith.constant 0 : i32
    return %c0_i32, %arg0 : i32, i32
  }
  func.func @transform_1(%arg0: i32, %arg1: memref<2x5xf32, #tpu.memory_space<smem>>, %arg2: memref<5xf32, #tpu.memory_space<smem>>, %arg3: memref<5x5xf32, #tpu.memory_space<smem>>, %arg4: memref<5xf32, #tpu.memory_space<smem>>, %arg5: memref<5x1xf32, #tpu.memory_space<smem>>, %arg6: memref<1xf32, #tpu.memory_space<smem>>) -> (i32, i32) {
    %c0_i32 = arith.constant 0 : i32
    %c0_i32_0 = arith.constant 0 : i32
    return %c0_i32, %arg0 : i32, i32
  }
}

</mosaic_0001>

<bundles_post_ra>
// kernel: tpu_custom_call.1
= control target key start
LH: loop header
LB: loop body
LE: loop exit
PB: predicated region body
PF: predicated region fallthrough
CT: control target
= control target key end

     0   :  { %s646_s0 = inlined_call_operand.hbm [shape: f32[2,5], index: 0, kind: input, shape index: {}]   ;;  %s647_s5 = inlined_call_operand.<no memory space> [shape: f32[1], index: 5, kind: input, shape index: {}]   ;;  %s648_s6 = inlined_call_operand.vmem [shape: f32[2,512], index: 6, kind: input, shape index: {}]   ;;  %s649_s7 = inlined_call_operand.hbm [shape: f32[1,512], index: 7, kind: output, shape index: {}]   ;;  %s650_s1 = inlined_call_operand.hbm [shape: f32[5], index: 1, kind: input, shape index: {}]   ;;  %s651_s2 = inlined_call_operand.vmem [shape: f32[5,5], index: 2, kind: input, shape index: {}]   ;;  %s652_s3 = inlined_call_operand.vmem [shape: f32[5], index: 3, kind: input, shape index: {}]   ;;  %s653_s4 = inlined_call_operand.vmem [shape: f32[5,1], index: 4, kind: input, shape index: {}]  }
   0x1   :  { %s300_s26 = scalar_lea.hbm %s646_s0, 32 }
   0x2   :  { %p301_p0 = scmp.ne.s32.totalorder %s646_s0, %s300_s26  ;;  %p304_p1 = scmp.lt.u32.totalorder %s300_s26, %s646_s0 }
   0x4   :  { %p306_p2 = pnand %p304_p1, %p301_p0 }
   0x6   :  { %309 = shalt.err (!%p306_p2)  }
   0x7   :  { %s382_s8 = smov [#allocation3]   ;;  %s310_s13 = scalar_lea.hbm %s650_s1, 16 }
   0x8   :  { %13 = dma.hbm_to_smem %s646_s0, 32, %s382_s8, [#allocation2] }
   0x9   :  { %p311_p3 = scmp.ne.s32.totalorder %s650_s1, %s310_s13  ;;  %p314_p4 = scmp.lt.u32.totalorder %s310_s13, %s650_s1 }
   0xb   :  { %p316_p5 = pnand %p314_p4, %p311_p3 }
   0xd   :  { %319 = shalt.err (!%p316_p5)  }
   0xe   :  { %s383_s18 = smov [#allocation4]   ;;  %s16_s22 = sshll.u32 %s651_s2, 4  ;;  %s17_s22 = int_to_ptr.vmem [resolvable:$true] %s16_s22 }
   0xf   :  { %15 = dma.hbm_to_smem %s650_s1, 16, %s383_s18, [#allocation2] }
  0x10   :  { %s20_s25 = sshll.u32 %s652_s3, 4  ;;  %s320_s26 = scalar_lea.vmem %s17_s22, 128  ;;  %s21_s25 = int_to_ptr.vmem [resolvable:$true] %s20_s25 }
  0x11   :  { %p321_p6 = scmp.ne.s32.totalorder %s17_s22, %s320_s26  ;;  %p325_p7 = scmp.lt.s32.totalorder %s17_s22, %s17_s22 }
  0x12   :  { %p326_p8 = scmp.lt.s32.totalorder %s320_s26, %s320_s26 }
  0x14   :  { %p327_p9 = por %p326_p8, %p325_p7 }
  0x16   :  { %p328_p10 = pnand %p327_p9, %p321_p6 }
  0x18   :  { %331 = shalt.err (!%p328_p10)  }
  0x19   :  { %s384_s27 = smov [#allocation5]   ;;  %s332_s1 = scalar_lea.vmem %s21_s25, 16 }
  0x1a   :  { %19 = dma.vmem_to_smem %s17_s22, 128, %s384_s27, [#allocation2] }
  0x1b   :  { %p333_p11 = scmp.ne.s32.totalorder %s21_s25, %s332_s1  ;;  %p337_p12 = scmp.lt.s32.totalorder %s21_s25, %s21_s25 }
  0x1c   :  { %p338_p13 = scmp.lt.s32.totalorder %s332_s1, %s332_s1 }
  0x1e   :  { %p339_p0 = por %p338_p13, %p337_p12 }
  0x20   :  { %p340_p1 = pnand %p339_p0, %p333_p11 }
  0x22   :  { %343 = shalt.err (!%p340_p1)  }
  0x23   :  { %s385_s2 = smov [#allocation6]   ;;  %s24_s29 = sshll.u32 %s653_s4, 4  ;;  %s25_s29 = int_to_ptr.vmem [resolvable:$true] %s24_s29 }
  0x24   :  { %23 = dma.vmem_to_smem %s21_s25, 16, %s385_s2, [#allocation2] }
  0x25   :  { %s344_s30 = scalar_lea.vmem %s25_s29, 128  ;;  %p349_p3 = scmp.lt.s32.totalorder %s25_s29, %s25_s29 }
  0x26   :  { %p345_p2 = scmp.ne.s32.totalorder %s25_s29, %s344_s30  ;;  %p350_p4 = scmp.lt.s32.totalorder %s344_s30, %s344_s30 }
  0x28   :  { %p351_p5 = por %p350_p4, %p349_p3 }
  0x2a   :  { %p352_p6 = pnand %p351_p5, %p345_p2 }
  0x2c   :  { %355 = shalt.err (!%p352_p6)  }
  0x2d   :  { %s386_s8 = smov [#allocation7]  }
  0x2e   :  { %27 = dma.vmem_to_smem %s25_s29, 128, %s386_s8, [#allocation2] }
  0x2f   :  { %378 = dma.done.wait [#allocation2], 320 }
  0x30   :  { %379 = vsyncadd [#allocation2], 4294966976 }
  0x31   :  { %30 = sfence }
  0x32   :  { %31 = vsyncpa [#allocation10], 0  ;;  %s37_s9 = sld [smem:[#allocation3]]  ;;  %v34_v0 = vld [vmem:[%s648_s6] ss:$2 sm:$0xf] }
  0x33   :  { %s249_s10 = sld [smem:[#allocation3 + $0x80]]  ;;  %s250_s13 = sld [smem:[#allocation3 + $0x1]]  ;;  %v248_v1 = vld [vmem:[%s648_s6 + $0x1] ss:$2 sm:$0xf] }
  0x34   :  { %s461_s11 = sld [smem:[#allocation4]]  ;;  %s251_s14 = sld [smem:[#allocation3 + $0x81]] }
  0x35   :  { %s469_s17 = sld [smem:[#allocation4 + $0x1]]  ;;  %s253_s18 = sld [smem:[#allocation3 + $0x2]] }
  0x36   :  { %s254_s19 = sld [smem:[#allocation3 + $0x82]]  ;;  %s473_s0 = sld [smem:[#allocation3 + $0x3]] }
  0x37   :  { %s471_s20 = sld [smem:[#allocation4 + $0x2]]  ;;  %s475_s21 = sld [smem:[#allocation3 + $0x83]] }
  0x38   :  { %v38_v2 = vstv %s37_s9  ;;  %s477_s22 = sld [smem:[#allocation4 + $0x3]]  ;;  %s479_s23 = sld [smem:[#allocation3 + $0x4]] }
  0x39   :  { %v39_v3 = vmul.f32 %v38_v2, %v34_v0  ;;  %v41_v4 = vstv %s249_s10  ;;  %s481_s24 = sld [smem:[#allocation3 + $0x84]]  ;;  %v49_v7 = vstv %s250_s13  ;;  %s486_s25 = sld [smem:[#allocation5]] }
  0x3a   :  { %s483_s6 = sld [smem:[#allocation4 + $0x4]]  ;;  %v42_v5 = vmul.f32 %v248_v1, %v41_v4  ;;  %v45_v6 = vstv %s461_s11  ;;  %v52_v8 = vstv %s251_s14  ;;  %s488_s26 = sld [smem:[#allocation5 + $0x80]]  ;;  %v50_v9 = vmul.f32 %v49_v7, %v34_v0 }
  0x3b   :  { %v53_v10 = vmul.f32 %v248_v1, %v52_v8  ;;  %v56_v11 = vstv %s469_s17  ;;  %v60_v12 = vstv %s253_s18  ;;  %s491_s27 = sld [smem:[#allocation5 + $0x100]]  ;;  %s500_s3 = sld [smem:[#allocation5 + $0x1]] }
  0x3c   :  { %s493_s1 = sld [smem:[#allocation5 + $0x180]]  ;;  %v43_v13 = vadd.f32 %v42_v5, %v39_v3  ;;  %v61_v14 = vmul.f32 %v60_v12, %v34_v0  ;;  %v63_v15 = vstv %s254_s19  ;;  %v71_v19 = vstv %s473_s0  ;;  %s502_s28 = sld [smem:[#allocation5 + $0x81]] }
  0x3d   :  { %v67_v16 = vstv %s471_s20  ;;  %s496_s2 = sld [smem:[#allocation5 + $0x200]]  ;;  %v54_v17 = vadd.f32 %v53_v10, %v50_v9  ;;  %v64_v18 = vmul.f32 %v248_v1, %v63_v15  ;;  %v74_v20 = vstv %s475_s21  ;;  %s505_s29 = sld [smem:[#allocation5 + $0x101]] }
  0x3e   :  { %v46_v21 = vadd.f32 %v45_v6, %v43_v13  ;;  %v72_v22 = vmul.f32 %v71_v19, %v34_v0  ;;  %v75_v23 = vmul.f32 %v248_v1, %v74_v20  ;;  %v78_v24 = vstv %s477_s22  ;;  %s509_s30 = sld [smem:[#allocation5 + $0x181]]  ;;  %s519_s9 = sld [smem:[#allocation6]] }
  0x3f   :  { %v57_v25 = vadd.f32 %v56_v11, %v54_v17  ;;  %v65_v26 = vadd.f32 %v64_v18, %v61_v14  ;;  %v82_v27 = vstv %s479_s23  ;;  %v85_v28 = vstv %s481_s24  ;;  %s511_s8 = sld [smem:[#allocation5 + $0x201]]  ;;  %s521_s10 = sld [smem:[#allocation5 + $0x2]] }
  0x40   :  { %v513_v29 = vmax.f32 %v46_v21, 0.0  ;;  %v76_v30 = vadd.f32 %v75_v23, %v72_v22  ;;  %v83_v31 = vmul.f32 %v82_v27, %v34_v0  ;;  %v86_v32 = vmul.f32 %v248_v1, %v85_v28  ;;  %s525_s11 = sld [smem:[#allocation5 + $0x82]]  ;;  %s539_s13 = sld [smem:[#allocation6 + $0x1]] }
  0x41   :  { %v515_v33 = vmax.f32 %v57_v25, 0.0  ;;  %v68_v34 = vadd.f32 %v67_v16, %v65_v26  ;;  %v89_v35 = vstv %s483_s6  ;;  %v93_v36 = vstv %s486_s25  ;;  %s527_s12 = sld [smem:[#allocation5 + $0x102]]  ;;  %s548_s16 = sld [smem:[#allocation5 + $0x3]] }
  0x42   :  { %v79_v37 = vadd.f32 %v78_v24, %v76_v30  ;;  %v87_v38 = vadd.f32 %v86_v32, %v83_v31  ;;  %v94_v39 = vmul.f32 %v93_v36, %v513_v29  ;;  %v96_v40 = vstv %s488_s26  ;;  %s534_s4 = sld [smem:[#allocation5 + $0x182]]  ;;  %s555_s17 = sld [smem:[#allocation5 + $0x83]] }
  0x43   :  { %v529_v41 = vmax.f32 %v68_v34, 0.0  ;;  %v97_v42 = vmul.f32 %v96_v40, %v515_v33  ;;  %v100_v43 = vstv %s491_s27  ;;  %v104_v44 = vstv %s493_s1  ;;  %s541_s14 = sld [smem:[#allocation5 + $0x202]]  ;;  %s557_s18 = sld [smem:[#allocation5 + $0x103]] }
  0x44   :  { %v536_v45 = vmax.f32 %v79_v37, 0.0  ;;  %v90_v46 = vadd.f32 %v89_v35, %v87_v38  ;;  %v108_v47 = vstv %s496_s2  ;;  %v116_v50 = vstv %s500_s3  ;;  %s546_s15 = sld [smem:[#allocation6 + $0x2]]  ;;  %s565_s19 = sld [smem:[#allocation5 + $0x183]] }
  0x45   :  { %v98_v48 = vadd.f32 %v97_v42, %v94_v39  ;;  %v101_v49 = vmul.f32 %v100_v43, %v529_v41  ;;  %v119_v51 = vstv %s502_s28  ;;  %v117_v54 = vmul.f32 %v116_v50, %v513_v29  ;;  %s567_s20 = sld [smem:[#allocation5 + $0x203]]  ;;  %s574_s21 = sld [smem:[#allocation5 + $0x4]] }
  0x46   :  { %v550_v52 = vmax.f32 %v90_v46, 0.0  ;;  %v105_v53 = vmul.f32 %v104_v44, %v536_v45  ;;  %v120_v55 = vmul.f32 %v119_v51, %v515_v33  ;;  %v123_v57 = vstv %s505_s29  ;;  %s572_s0 = sld [smem:[#allocation6 + $0x3]]  ;;  %s579_s22 = sld [smem:[#allocation5 + $0x84]] }
  0x47   :  { %v102_v56 = vadd.f32 %v101_v49, %v98_v48  ;;  %v127_v58 = vstv %s509_s30  ;;  %v131_v59 = vstv %s511_s8  ;;  %v124_v62 = vmul.f32 %v123_v57, %v529_v41  ;;  %s581_s23 = sld [smem:[#allocation5 + $0x104]]  ;;  %s595_s25 = sld [smem:[#allocation7]] }
  0x48   :  { %v109_v60 = vmul.f32 %v108_v47, %v550_v52  ;;  %v121_v61 = vadd.f32 %v120_v55, %v117_v54  ;;  %v128_v63 = vmul.f32 %v127_v58, %v536_v45  ;;  %v112_v1 = vstv %s519_s9  ;;  %s589_s24 = sld [smem:[#allocation5 + $0x184]]  ;;  %s600_s26 = sld [smem:[#allocation7 + $0x80]] }
  0x49   :  { %v106_v0 = vadd.f32 %v105_v53, %v102_v56  ;;  %v132_v2 = vmul.f32 %v131_v59, %v550_v52  ;;  %v139_v3 = vstv %s521_s10  ;;  %v142_v6 = vstv %s525_s11  ;;  %s591_s6 = sld [smem:[#allocation5 + $0x204]]  ;;  %s602_s27 = sld [smem:[#allocation7 + $0x100]] }
  0x4a   :  { %v125_v4 = vadd.f32 %v124_v62, %v121_v61  ;;  %v140_v5 = vmul.f32 %v139_v3, %v513_v29  ;;  %v146_v7 = vstv %s527_s12  ;;  %v143_v9 = vmul.f32 %v142_v6, %v515_v33  ;;  %s615_s1 = sld [smem:[#allocation6 + $0x4]]  ;;  %s617_s2 = sld [smem:[#allocation7 + $0x180]] }
  0x4b   :  { %v110_v8 = vadd.f32 %v109_v60, %v106_v0  ;;  %v147_v10 = vmul.f32 %v146_v7, %v529_v41  ;;  %v150_v11 = vstv %s534_s4  ;;  %v135_v13 = vstv %s539_s13  ;;  %s293_s3 = sld [smem:[#allocation7 + $0x200]]  ;;  %s387_s30 = smov [#allocation9]  }
  0x4c   :  { %v129_v12 = vadd.f32 %v128_v63, %v125_v4  ;;  %v151_v14 = vmul.f32 %v150_v11, %v536_v45  ;;  %v154_v15 = vstv %s541_s14  ;;  %v144_v17 = vadd.f32 %v143_v9, %v140_v5  ;;  %s240_s8 = sshll.u32 %s387_s30, 4  ;;  %s241_s8 = int_to_ptr.vmem [resolvable:$true] %s240_s8 }
  0x4d   :  { %v113_v16 = vadd.f32 %v112_v1, %v110_v8  ;;  %v158_v18 = vstv %s546_s15  ;;  %v162_v19 = vstv %s548_s16  ;;  %v165_v22 = vstv %s555_s17  ;;  %s356_s9 = scalar_lea.vmem %s241_s8, 64  ;;  %p361_p8 = scmp.lt.s32.totalorder %s241_s8, %s241_s8 }
  0x4e   :  { %v133_v20 = vadd.f32 %v132_v2, %v129_v12  ;;  %v163_v21 = vmul.f32 %v162_v19, %v513_v29  ;;  %v169_v23 = vstv %s557_s18  ;;  %v148_v24 = vadd.f32 %v147_v10, %v144_v17  ;;  %p357_p7 = scmp.ne.s32.totalorder %s241_s8, %s356_s9  ;;  %p362_p9 = scmp.lt.s32.totalorder %s356_s9, %s356_s9 }
  0x4f   :  { %v155_v25 = vmul.f32 %v154_v15, %v550_v52  ;;  %v166_v26 = vmul.f32 %v165_v22, %v515_v33  ;;  %v170_v27 = vmul.f32 %v169_v23, %v529_v41  ;;  %v114_v28 = vmax.f32 %v113_v16, 0.0 }
  0x50   :  { %v136_v30 = vadd.f32 %v135_v13, %v133_v20  ;;  %v173_v31 = vstv %s565_s19  ;;  %v177_v32 = vstv %s567_s20  ;;  %v152_v34 = vadd.f32 %v151_v14, %v148_v24  ;;  %p363_p10 = por %p362_p9, %p361_p8 }
  0x51   :  { %v167_v35 = vadd.f32 %v166_v26, %v163_v21  ;;  %v174_v36 = vmul.f32 %v173_v31, %v536_v45  ;;  %v181_v37 = vstv %s572_s0  ;;  %v178_v38 = vmul.f32 %v177_v32, %v550_v52 }
  0x52   :  { %v185_v39 = vstv %s574_s21  ;;  %v188_v40 = vstv %s579_s22  ;;  %v192_v42 = vstv %s581_s23  ;;  %v156_v43 = vadd.f32 %v155_v25, %v152_v34  ;;  %p364_p11 = pnand %p363_p10, %p357_p7 }
  0x53   :  { %v171_v44 = vadd.f32 %v170_v27, %v167_v35  ;;  %v186_v46 = vmul.f32 %v185_v39, %v513_v29  ;;  %v189_v47 = vmul.f32 %v188_v40, %v515_v33  ;;  %v137_v48 = vmax.f32 %v136_v30, 0.0 }
  0x54   :  { %v193_v49 = vmul.f32 %v192_v42, %v529_v41  ;;  %v196_v50 = vstv %s589_s24  ;;  %v200_v51 = vstv %s591_s6  ;;  %v159_v53 = vadd.f32 %v158_v18, %v156_v43 }
  0x55   :  { %v175_v54 = vadd.f32 %v174_v36, %v171_v44  ;;  %v190_v55 = vadd.f32 %v189_v47, %v186_v46  ;;  %v197_v56 = vmul.f32 %v196_v50, %v536_v45  ;;  %v201_v57 = vmul.f32 %v200_v51, %v550_v52 }
  0x56   :  { %v208_v58 = vstv %s595_s25  ;;  %v211_v59 = vstv %s600_s26  ;;  %v215_v60 = vstv %s602_s27  ;;  %v160_v29 = vmax.f32 %v159_v53, 0.0 }
  0x57   :  { %v179_v33 = vadd.f32 %v178_v38, %v175_v54  ;;  %v194_v61 = vadd.f32 %v193_v49, %v190_v55  ;;  %v209_v62 = vmul.f32 %v208_v58, %v114_v28  ;;  %v212_v41 = vmul.f32 %v211_v59, %v137_v48 }
  0x58   :  { %v216_v1 = vmul.f32 %v215_v60, %v160_v29  ;;  %v204_v2 = vstv %s615_s1  ;;  %v219_v4 = vstv %s617_s2  ;;  %v223_v8 = vstv %s293_s3 }
  0x59   :  { %v182_v63 = vadd.f32 %v181_v37, %v179_v33  ;;  %v198_v0 = vadd.f32 %v197_v56, %v194_v61  ;;  %v213_v3 = vadd.f32 %v212_v41, %v209_v62  ;;  %v229_v11 = vlaneseq }
  0x5a   :  { %v227_v13 = vstv %s647_s5 }
  0x5b   :  { %v183_v5 = vmax.f32 %v182_v63, 0.0  ;;  %v202_v45 = vadd.f32 %v201_v57, %v198_v0  ;;  %v217_v6 = vadd.f32 %v216_v1, %v213_v3  ;;  %vm231_vm0 = vcmp.lt.s32.totalorder %v229_v11, 512 }
  0x5d   :  { %v205_v7 = vadd.f32 %v204_v2, %v202_v45  ;;  %v220_v52 = vmul.f32 %v219_v4, %v183_v5 }
  0x5f   :  { %v206_v9 = vmax.f32 %v205_v7, 0.0  ;;  %v221_v10 = vadd.f32 %v220_v52, %v217_v6 }
  0x61   :  { %v224_v12 = vmul.f32 %v223_v8, %v206_v9 }
  0x63   :  { %v225_v14 = vadd.f32 %v224_v12, %v221_v10 }
  0x65   :  { %v228_v15 = vadd.f32 %v227_v13, %v225_v14 }
  0x67   :  { %233 = vst.msk [vmem:[#allocation9] sm:$0xf] %vm231_vm0, %v228_v15 }
  0x68   :  { %367 = shalt.err (!%p364_p11)
}
  0x69   :  { %s368_s12 = scalar_lea.hbm %s649_s7, 64 }
  0x6a   :  { %p369_p12 = scmp.ne.s32.totalorder %s649_s7, %s368_s12  ;;  %p372_p13 = scmp.lt.u32.totalorder %s368_s12, %s649_s7 }
  0x6c   :  { %p374_p0 = pnand %p372_p13, %p369_p12 }
  0x6e   :  { %377 = shalt.err (!%p374_p0)
}
  0x6f   :  { %243 = dma.vmem_to_hbm [thread:$0]  %s241_s8, 64, %s649_s7, [#allocation10]  }
  0x70   :  { %380 = dma.done.wait [#allocation10], 64  }
  0x71   :  { %381 = vsyncadd [#allocation10], 4294967232 }
  0x72   :  { %247 = vsyncpa [#allocation10], 1 }

</bundles_post_ra>
